<compile_context>
chip_gen: v7x
topology: tpu7x:2x2x1
jax: 0.10.0
libtpu: 0.0.40
codegen_flags: <defaults>
</compile_context>

<pallas_src>
import functools

import jax
import jax.numpy as jnp
from jax.experimental import pallas as pl
from jax.experimental.pallas import tpu as pltpu

EPS = 1e-5  # nn.InstanceNorm3d default (affine=False, biased variance)


def _instance_norm(y, inv_s):
    # y: (C, S) f32 — per-channel (row) normalization over the lane (spatial) axis.
    # Single-pass stats: one reduce sweep for sum and sum-of-squares, one normalize sweep.
    mean = jnp.sum(y, axis=1, keepdims=True) * inv_s
    ex2 = jnp.sum(y * y, axis=1, keepdims=True) * inv_s
    var = ex2 - mean * mean
    return (y - mean) * jax.lax.rsqrt(var + EPS)          # rsqrt -> EUP slot (free-ish)


def _encoder_kernel(inv_s,
                    x_ref,
                    w1a_ref, w1b_ref, w2a_ref, w2b_ref, w3_ref, b3_ref,
                    out_ref):
    x = x_ref[...]                                                    # (Cin, S)

    # ---- conv1 stage: Conv1x1 -> IN -> Dropout(eval id) -> ReLU -> Conv1x1 -> IN ----
    # (biases of IN-fed convs are exactly cancelled by the mean subtraction -> dropped)
    t = jnp.dot(w1a_ref[...], x, preferred_element_type=jnp.float32)  # (Cout, S) MXU
    t = jnp.maximum(_instance_norm(t, inv_s), 0.0)
    # TODO(synk): Dropout3d has no deterministic Pallas equivalent; eval-mode identity used.
    u = _instance_norm(
        jnp.dot(w1b_ref[...], t, preferred_element_type=jnp.float32), inv_s)

    # ---- conv3 residual branch on the original input (bias kept: no IN follows) ----
    r = jnp.dot(w3_ref[...], x, preferred_element_type=jnp.float32) + b3_ref[...]
    x1 = jnp.maximum(u + r, 0.0)

    # ---- conv2 stage on x1, residual with x1 ----
    t2 = jnp.dot(w2a_ref[...], x1, preferred_element_type=jnp.float32)
    t2 = jnp.maximum(_instance_norm(t2, inv_s), 0.0)
    u2 = _instance_norm(
        jnp.dot(w2b_ref[...], t2, preferred_element_type=jnp.float32), inv_s)

    out_ref[...] = jnp.maximum(u2 + x1, 0.0)


def encoder_forward(x, params):
    # x: (N, Cin, D, H, W) NCDHW (PyTorch convention); returns NCDHW.
    N, Cin, D, H, Wd = x.shape
    Cout = params["w1a"].shape[0]
    S = D * H * Wd

    xf = x.reshape(N, Cin, S)              # free reshape (NCDHW is already channel-major)

    def squeeze_w(w):                      # (Cout, Cin_, 1, 1, 1) -> (Cout, Cin_)
        return w.reshape(w.shape[0], w.shape[1])

    w1a = squeeze_w(params["w1a"])
    w1b = squeeze_w(params["w1b"])
    w2a = squeeze_w(params["w2a"])
    w2b = squeeze_w(params["w2b"])
    w3 = squeeze_w(params["w3"])
    b3 = params["b3"].reshape(Cout, 1)

    def full2d(shp):
        # Weight tiles are tiny and grid-invariant (constant index_map -> DMA'd once).
        return pl.BlockSpec(shp, lambda n: (0, 0))

    def per_n(c):
        # Leading batch dim squeezed -> kernel sees a clean (C, S) lane-dense tile.
        return pl.BlockSpec((None, c, S), lambda n: (n, 0, 0))

    out = pl.pallas_call(
        functools.partial(_encoder_kernel, 1.0 / S),
        out_shape=jax.ShapeDtypeStruct((N, Cout, S), jnp.float32),
        grid=(N,),
        in_specs=[per_n(Cin),
                  full2d((Cout, Cin)), full2d((Cout, Cout)),
                  full2d((Cout, Cout)), full2d((Cout, Cout)),
                  full2d((Cout, Cin)), full2d((Cout, 1))],
        out_specs=per_n(Cout),
        compiler_params=pltpu.CompilerParams(dimension_semantics=("parallel",)),
    )(xf, w1a, w1b, w2a, w2b, w3, b3)

    return out.reshape(N, Cout, D, H, Wd)  # free reshape back to NCDHW


if __name__ == "__main__":
    key = jax.random.PRNGKey(0)
    # S = 8*8*8 = 512 -> multiple of 128 (lane-dense, unmasked stores); N=2 -> two
    # "parallel" grid steps, one per TensorCore on megacore parts.
    N, Cin, Cout, D, H, Wd = 2, 4, 8, 8, 8, 8
    ks = jax.random.split(key, 11)
    x = jax.random.normal(ks[0], (N, Cin, D, H, Wd), jnp.float32)
    params = dict(
        w1a=0.3 * jax.random.normal(ks[1], (Cout, Cin, 1, 1, 1), jnp.float32),
        b1a=0.1 * jax.random.normal(ks[2], (Cout,), jnp.float32),
        w1b=0.3 * jax.random.normal(ks[3], (Cout, Cout, 1, 1, 1), jnp.float32),
        b1b=0.1 * jax.random.normal(ks[4], (Cout,), jnp.float32),
        w2a=0.3 * jax.random.normal(ks[5], (Cout, Cout, 1, 1, 1), jnp.float32),
        b2a=0.1 * jax.random.normal(ks[6], (Cout,), jnp.float32),
        w2b=0.3 * jax.random.normal(ks[7], (Cout, Cout, 1, 1, 1), jnp.float32),
        b2b=0.1 * jax.random.normal(ks[8], (Cout,), jnp.float32),
        w3=0.3 * jax.random.normal(ks[9], (Cout, Cin, 1, 1, 1), jnp.float32),
        b3=0.1 * jax.random.normal(ks[10], (Cout,), jnp.float32),
    )

    out = jax.block_until_ready(encoder_forward(x, params))

    # pure-JAX reference (eval mode: Dropout3d identity; all conv biases included).
    def conv1x1(v, w, b):
        y = jax.lax.conv_general_dilated(
            v, w, (1, 1, 1), [(0, 0)] * 3,
            dimension_numbers=('NCDHW', 'OIDHW', 'NCDHW'))
        return y + b[None, :, None, None, None]

    def inorm(v):
        m = v.mean(axis=(2, 3, 4), keepdims=True)
        var = ((v - m) ** 2).mean(axis=(2, 3, 4), keepdims=True)
        return (v - m) * jax.lax.rsqrt(var + EPS)

    t = jnp.maximum(inorm(conv1x1(x, params["w1a"], params["b1a"])), 0.0)
    x1 = inorm(conv1x1(t, params["w1b"], params["b1b"]))
    xr = conv1x1(x, params["w3"], params["b3"])
    x1 = jnp.maximum(x1 + xr, 0.0)
    t2 = jnp.maximum(inorm(conv1x1(x1, params["w2a"], params["b2a"])), 0.0)
    x2 = inorm(conv1x1(t2, params["w2b"], params["b2b"]))
    ref = jnp.maximum(x2 + x1, 0.0)

    assert out.shape == (N, Cout, D, H, Wd)
    err = float(jnp.max(jnp.abs(out - ref)))
    assert jnp.allclose(out, ref, atol=1e-2, rtol=1e-2), f"max abs err = {err}"
    print("KERNEL_OK")
</pallas_src>

<mosaic_0001>
module attributes {stable_mosaic.version = 11 : i64} {
  func.func @_encoder_kernel(%arg0: i32, %arg1: memref<1x4x512xf32, #tpu.memory_space<vmem>>, %arg2: memref<8x4xf32, #tpu.memory_space<vmem>>, %arg3: memref<8x8xf32, #tpu.memory_space<vmem>>, %arg4: memref<8x8xf32, #tpu.memory_space<vmem>>, %arg5: memref<8x8xf32, #tpu.memory_space<vmem>>, %arg6: memref<8x4xf32, #tpu.memory_space<vmem>>, %arg7: memref<8x1xf32, #tpu.memory_space<vmem>>, %arg8: memref<1x8x512xf32, #tpu.memory_space<vmem>>) attributes {dimension_semantics = [#tpu.dimension_semantics<parallel>], iteration_bounds = array<i64: 2>, scalar_prefetch = 0 : i64, scratch_operands = 0 : i64, tpu.core_type = #tpu.core_type<tc>, window_params = [{transform_indices = @transform_0, window_bounds = array<i64: 1, 4, 512>}, {pipeline_mode = #tpu.pipeline_mode<synchronous>, transform_indices = @transform_1, window_bounds = array<i64: 8, 4>}, {pipeline_mode = #tpu.pipeline_mode<synchronous>, transform_indices = @transform_2, window_bounds = array<i64: 8, 8>}, {pipeline_mode = #tpu.pipeline_mode<synchronous>, transform_indices = @transform_3, window_bounds = array<i64: 8, 8>}, {pipeline_mode = #tpu.pipeline_mode<synchronous>, transform_indices = @transform_4, window_bounds = array<i64: 8, 8>}, {pipeline_mode = #tpu.pipeline_mode<synchronous>, transform_indices = @transform_5, window_bounds = array<i64: 8, 4>}, {pipeline_mode = #tpu.pipeline_mode<synchronous>, transform_indices = @transform_6, window_bounds = array<i64: 8, 1>}, {transform_indices = @transform_7, window_bounds = array<i64: 1, 8, 512>}]} {
    %c0 = arith.constant 0 : index
    %c0_0 = arith.constant 0 : index
    %c0_1 = arith.constant 0 : index
    %0 = vector.load %arg1[%c0, %c0_0, %c0_1] : memref<1x4x512xf32, #tpu.memory_space<vmem>>, vector<1x4x512xf32>
    %1 = vector.shape_cast %0 : vector<1x4x512xf32> to vector<4x512xf32>
    %c0_2 = arith.constant 0 : index
    %c0_3 = arith.constant 0 : index
    %2 = vector.load %arg2[%c0_2, %c0_3] : memref<8x4xf32, #tpu.memory_space<vmem>>, vector<8x4xf32>
    %cst = arith.constant dense<0.000000e+00> : vector<8x512xf32>
    %3 = tpu.matmul %2, %1, %cst {dimension_numbers = #tpu.dot_dimension_numbers<[1], [0], [0], [1], [0, 0, 1, 1], [], []>} : vector<8x4xf32>, vector<4x512xf32>, vector<8x512xf32> -> vector<8x512xf32>
    %cst_4 = arith.constant dense<0.000000e+00> : vector<8xf32>
    %4 = vector.multi_reduction <add>, %3, %cst_4 [1] : vector<8x512xf32> to vector<8xf32>
    %5 = vector.shape_cast %4 : vector<8xf32> to vector<8x1xf32>
    %cst_5 = arith.constant 0.001953125 : f32
    %6 = vector.broadcast %cst_5 : f32 to vector<8x1xf32>
    %7 = arith.mulf %5, %6 : vector<8x1xf32>
    %8 = arith.mulf %3, %3 : vector<8x512xf32>
    %cst_6 = arith.constant dense<0.000000e+00> : vector<8xf32>
    %9 = vector.multi_reduction <add>, %8, %cst_6 [1] : vector<8x512xf32> to vector<8xf32>
    %10 = vector.shape_cast %9 : vector<8xf32> to vector<8x1xf32>
    %cst_7 = arith.constant 0.001953125 : f32
    %11 = vector.broadcast %cst_7 : f32 to vector<8x1xf32>
    %12 = arith.mulf %10, %11 : vector<8x1xf32>
    %13 = arith.mulf %7, %7 : vector<8x1xf32>
    %14 = arith.subf %12, %13 : vector<8x1xf32>
    %15 = vector.broadcast %7 : vector<8x1xf32> to vector<8x512xf32>
    %16 = arith.subf %3, %15 : vector<8x512xf32>
    %cst_8 = arith.constant 9.99999974E-6 : f32
    %17 = vector.broadcast %cst_8 : f32 to vector<8x1xf32>
    %18 = arith.addf %14, %17 : vector<8x1xf32>
    %19 = math.rsqrt %18 : vector<8x1xf32>
    %20 = vector.broadcast %19 : vector<8x1xf32> to vector<8x512xf32>
    %21 = arith.mulf %16, %20 : vector<8x512xf32>
    %cst_9 = arith.constant 0.000000e+00 : f32
    %22 = vector.broadcast %cst_9 : f32 to vector<8x512xf32>
    %23 = arith.maximumf %21, %22 : vector<8x512xf32>
    %c0_10 = arith.constant 0 : index
    %c0_11 = arith.constant 0 : index
    %24 = vector.load %arg3[%c0_10, %c0_11] : memref<8x8xf32, #tpu.memory_space<vmem>>, vector<8x8xf32>
    %cst_12 = arith.constant dense<0.000000e+00> : vector<8x512xf32>
    %25 = tpu.matmul %24, %23, %cst_12 {dimension_numbers = #tpu.dot_dimension_numbers<[1], [0], [0], [1], [0, 0, 1, 1], [], []>} : vector<8x8xf32>, vector<8x512xf32>, vector<8x512xf32> -> vector<8x512xf32>
    %cst_13 = arith.constant dense<0.000000e+00> : vector<8xf32>
    %26 = vector.multi_reduction <add>, %25, %cst_13 [1] : vector<8x512xf32> to vector<8xf32>
    %27 = vector.shape_cast %26 : vector<8xf32> to vector<8x1xf32>
    %cst_14 = arith.constant 0.001953125 : f32
    %28 = vector.broadcast %cst_14 : f32 to vector<8x1xf32>
    %29 = arith.mulf %27, %28 : vector<8x1xf32>
    %30 = arith.mulf %25, %25 : vector<8x512xf32>
    %cst_15 = arith.constant dense<0.000000e+00> : vector<8xf32>
    %31 = vector.multi_reduction <add>, %30, %cst_15 [1] : vector<8x512xf32> to vector<8xf32>
    %32 = vector.shape_cast %31 : vector<8xf32> to vector<8x1xf32>
    %cst_16 = arith.constant 0.001953125 : f32
    %33 = vector.broadcast %cst_16 : f32 to vector<8x1xf32>
    %34 = arith.mulf %32, %33 : vector<8x1xf32>
    %35 = arith.mulf %29, %29 : vector<8x1xf32>
    %36 = arith.subf %34, %35 : vector<8x1xf32>
    %37 = vector.broadcast %29 : vector<8x1xf32> to vector<8x512xf32>
    %38 = arith.subf %25, %37 : vector<8x512xf32>
    %cst_17 = arith.constant 9.99999974E-6 : f32
    %39 = vector.broadcast %cst_17 : f32 to vector<8x1xf32>
    %40 = arith.addf %36, %39 : vector<8x1xf32>
    %41 = math.rsqrt %40 : vector<8x1xf32>
    %42 = vector.broadcast %41 : vector<8x1xf32> to vector<8x512xf32>
    %43 = arith.mulf %38, %42 : vector<8x512xf32>
    %c0_18 = arith.constant 0 : index
    %c0_19 = arith.constant 0 : index
    %44 = vector.load %arg6[%c0_18, %c0_19] : memref<8x4xf32, #tpu.memory_space<vmem>>, vector<8x4xf32>
    %cst_20 = arith.constant dense<0.000000e+00> : vector<8x512xf32>
    %45 = tpu.matmul %44, %1, %cst_20 {dimension_numbers = #tpu.dot_dimension_numbers<[1], [0], [0], [1], [0, 0, 1, 1], [], []>} : vector<8x4xf32>, vector<4x512xf32>, vector<8x512xf32> -> vector<8x512xf32>
    %c0_21 = arith.constant 0 : index
    %c0_22 = arith.constant 0 : index
    %46 = vector.load %arg7[%c0_21, %c0_22] : memref<8x1xf32, #tpu.memory_space<vmem>>, vector<8x1xf32>
    %47 = vector.broadcast %46 : vector<8x1xf32> to vector<8x512xf32>
    %48 = arith.addf %45, %47 : vector<8x512xf32>
    %49 = arith.addf %43, %48 : vector<8x512xf32>
    %cst_23 = arith.constant 0.000000e+00 : f32
    %50 = vector.broadcast %cst_23 : f32 to vector<8x512xf32>
    %51 = arith.maximumf %49, %50 : vector<8x512xf32>
    %c0_24 = arith.constant 0 : index
    %c0_25 = arith.constant 0 : index
    %52 = vector.load %arg4[%c0_24, %c0_25] : memref<8x8xf32, #tpu.memory_space<vmem>>, vector<8x8xf32>
    %cst_26 = arith.constant dense<0.000000e+00> : vector<8x512xf32>
    %53 = tpu.matmul %52, %51, %cst_26 {dimension_numbers = #tpu.dot_dimension_numbers<[1], [0], [0], [1], [0, 0, 1, 1], [], []>} : vector<8x8xf32>, vector<8x512xf32>, vector<8x512xf32> -> vector<8x512xf32>
    %cst_27 = arith.constant dense<0.000000e+00> : vector<8xf32>
    %54 = vector.multi_reduction <add>, %53, %cst_27 [1] : vector<8x512xf32> to vector<8xf32>
    %55 = vector.shape_cast %54 : vector<8xf32> to vector<8x1xf32>
    %cst_28 = arith.constant 0.001953125 : f32
    %56 = vector.broadcast %cst_28 : f32 to vector<8x1xf32>
    %57 = arith.mulf %55, %56 : vector<8x1xf32>
    %58 = arith.mulf %53, %53 : vector<8x512xf32>
    %cst_29 = arith.constant dense<0.000000e+00> : vector<8xf32>
    %59 = vector.multi_reduction <add>, %58, %cst_29 [1] : vector<8x512xf32> to vector<8xf32>
    %60 = vector.shape_cast %59 : vector<8xf32> to vector<8x1xf32>
    %cst_30 = arith.constant 0.001953125 : f32
    %61 = vector.broadcast %cst_30 : f32 to vector<8x1xf32>
    %62 = arith.mulf %60, %61 : vector<8x1xf32>
    %63 = arith.mulf %57, %57 : vector<8x1xf32>
    %64 = arith.subf %62, %63 : vector<8x1xf32>
    %65 = vector.broadcast %57 : vector<8x1xf32> to vector<8x512xf32>
    %66 = arith.subf %53, %65 : vector<8x512xf32>
    %cst_31 = arith.constant 9.99999974E-6 : f32
    %67 = vector.broadcast %cst_31 : f32 to vector<8x1xf32>
    %68 = arith.addf %64, %67 : vector<8x1xf32>
    %69 = math.rsqrt %68 : vector<8x1xf32>
    %70 = vector.broadcast %69 : vector<8x1xf32> to vector<8x512xf32>
    %71 = arith.mulf %66, %70 : vector<8x512xf32>
    %cst_32 = arith.constant 0.000000e+00 : f32
    %72 = vector.broadcast %cst_32 : f32 to vector<8x512xf32>
    %73 = arith.maximumf %71, %72 : vector<8x512xf32>
    %c0_33 = arith.constant 0 : index
    %c0_34 = arith.constant 0 : index
    %74 = vector.load %arg5[%c0_33, %c0_34] : memref<8x8xf32, #tpu.memory_space<vmem>>, vector<8x8xf32>
    %cst_35 = arith.constant dense<0.000000e+00> : vector<8x512xf32>
    %75 = tpu.matmul %74, %73, %cst_35 {dimension_numbers = #tpu.dot_dimension_numbers<[1], [0], [0], [1], [0, 0, 1, 1], [], []>} : vector<8x8xf32>, vector<8x512xf32>, vector<8x512xf32> -> vector<8x512xf32>
    %cst_36 = arith.constant dense<0.000000e+00> : vector<8xf32>
    %76 = vector.multi_reduction <add>, %75, %cst_36 [1] : vector<8x512xf32> to vector<8xf32>
    %77 = vector.shape_cast %76 : vector<8xf32> to vector<8x1xf32>
    %cst_37 = arith.constant 0.001953125 : f32
    %78 = vector.broadcast %cst_37 : f32 to vector<8x1xf32>
    %79 = arith.mulf %77, %78 : vector<8x1xf32>
    %80 = arith.mulf %75, %75 : vector<8x512xf32>
    %cst_38 = arith.constant dense<0.000000e+00> : vector<8xf32>
    %81 = vector.multi_reduction <add>, %80, %cst_38 [1] : vector<8x512xf32> to vector<8xf32>
    %82 = vector.shape_cast %81 : vector<8xf32> to vector<8x1xf32>
    %cst_39 = arith.constant 0.001953125 : f32
    %83 = vector.broadcast %cst_39 : f32 to vector<8x1xf32>
    %84 = arith.mulf %82, %83 : vector<8x1xf32>
    %85 = arith.mulf %79, %79 : vector<8x1xf32>
    %86 = arith.subf %84, %85 : vector<8x1xf32>
    %87 = vector.broadcast %79 : vector<8x1xf32> to vector<8x512xf32>
    %88 = arith.subf %75, %87 : vector<8x512xf32>
    %cst_40 = arith.constant 9.99999974E-6 : f32
    %89 = vector.broadcast %cst_40 : f32 to vector<8x1xf32>
    %90 = arith.addf %86, %89 : vector<8x1xf32>
    %91 = math.rsqrt %90 : vector<8x1xf32>
    %92 = vector.broadcast %91 : vector<8x1xf32> to vector<8x512xf32>
    %93 = arith.mulf %88, %92 : vector<8x512xf32>
    %94 = arith.addf %93, %51 : vector<8x512xf32>
    %cst_41 = arith.constant 0.000000e+00 : f32
    %95 = vector.broadcast %cst_41 : f32 to vector<8x512xf32>
    %96 = arith.maximumf %94, %95 : vector<8x512xf32>
    %c0_42 = arith.constant 0 : index
    %c0_43 = arith.constant 0 : index
    %c0_44 = arith.constant 0 : index
    %97 = vector.load %arg8[%c0_42, %c0_43, %c0_44] : memref<1x8x512xf32, #tpu.memory_space<vmem>>, vector<1x8x512xf32>
    %98 = vector.shape_cast %97 : vector<1x8x512xf32> to vector<8x512xf32>
    %99 = vector.shape_cast %96 : vector<8x512xf32> to vector<1x8x512xf32>
    tpu.vector_store %arg8[%c0_42, %c0_43, %c0_44], %99 {strides = array<i32>} : memref<1x8x512xf32, #tpu.memory_space<vmem>>, vector<1x8x512xf32>,
    return
  }
  func.func @transform_0(%arg0: i32) -> (i32, i32, i32) {
    %c0_i32 = arith.constant 0 : i32
    %c0_i32_0 = arith.constant 0 : i32
    %c0_i32_1 = arith.constant 0 : i32
    return %arg0, %c0_i32, %c0_i32_0 : i32, i32, i32
  }
  func.func @transform_1(%arg0: i32) -> (i32, i32) {
    %c0_i32 = arith.constant 0 : i32
    %c0_i32_0 = arith.constant 0 : i32
    %c0_i32_1 = arith.constant 0 : i32
    return %c0_i32, %c0_i32_0 : i32, i32
  }
  func.func @transform_2(%arg0: i32) -> (i32, i32) {
    %c0_i32 = arith.constant 0 : i32
    %c0_i32_0 = arith.constant 0 : i32
    %c0_i32_1 = arith.constant 0 : i32
    return %c0_i32, %c0_i32_0 : i32, i32
  }
  func.func @transform_3(%arg0: i32) -> (i32, i32) {
    %c0_i32 = arith.constant 0 : i32
    %c0_i32_0 = arith.constant 0 : i32
    %c0_i32_1 = arith.constant 0 : i32
    return %c0_i32, %c0_i32_0 : i32, i32
  }
  func.func @transform_4(%arg0: i32) -> (i32, i32) {
    %c0_i32 = arith.constant 0 : i32
    %c0_i32_0 = arith.constant 0 : i32
    %c0_i32_1 = arith.constant 0 : i32
    return %c0_i32, %c0_i32_0 : i32, i32
  }
  func.func @transform_5(%arg0: i32) -> (i32, i32) {
    %c0_i32 = arith.constant 0 : i32
    %c0_i32_0 = arith.constant 0 : i32
    %c0_i32_1 = arith.constant 0 : i32
    return %c0_i32, %c0_i32_0 : i32, i32
  }
  func.func @transform_6(%arg0: i32) -> (i32, i32) {
    %c0_i32 = arith.constant 0 : i32
    %c0_i32_0 = arith.constant 0 : i32
    %c0_i32_1 = arith.constant 0 : i32
    return %c0_i32, %c0_i32_0 : i32, i32
  }
  func.func @transform_7(%arg0: i32) -> (i32, i32, i32) {
    %c0_i32 = arith.constant 0 : i32
    %c0_i32_0 = arith.constant 0 : i32
    %c0_i32_1 = arith.constant 0 : i32
    return %arg0, %c0_i32, %c0_i32_0 : i32, i32, i32
  }
}

</mosaic_0001>

<bundles_post_ra>
// kernel: tpu_custom_call.1
= control target key start
LH: loop header
LB: loop body
LE: loop exit
PB: predicated region body
PF: predicated region fallthrough
CT: control target
= control target key end

     0   :  { %12 = vsyncpa [#allocation3], 0  ;;  %s1724_s0 = inlined_call_operand.vmem [shape: f32[2,4,512], index: 0, kind: input, shape index: {}]   ;;  %s1725_s1 = inlined_call_operand.vmem [shape: f32[8,4], index: 1, kind: input, shape index: {}]   ;;  %s1726_s2 = inlined_call_operand.vmem [shape: f32[8,8], index: 2, kind: input, shape index: {}]   ;;  %s1727_s3 = inlined_call_operand.hbm [shape: f32[8,8], index: 3, kind: input, shape index: {}]   ;;  %s1728_s4 = inlined_call_operand.vmem [shape: f32[8,8], index: 4, kind: input, shape index: {}]   ;;  %s1729_s5 = inlined_call_operand.vmem [shape: f32[8,4], index: 5, kind: input, shape index: {}]   ;;  %s1730_s6 = inlined_call_operand.vmem [shape: f32[8,1], index: 6, kind: input, shape index: {}]   ;;  %s1731_s7 = inlined_call_operand.hbm [shape: f32[2,8,512], index: 7, kind: output, shape index: {}]  }
   0x1   :  { %13 = vsyncpa [#allocation4], 0 }
   0x2   :  { %15 = vsyncpa [#allocation4 + $0x1], 0  ;;  %s1506_s24 = smov 0   ;;  %s1508_s25 = smov 0  }
   0x3   :  { %s1510_s26 = smov 0   ;;  %s1512_s27 = smov 0  }
   0x4 LB: > { %s1527_s28 = sadd.s32 4294967295, %s1460_s27   ;;  %s1269_s29 = sadd.s32 4294967294, %s1460_s27   ;;  %s1460_s27 = sphi %s1512_s27, %s1747_s27   ;;  %s1456_s26 = sphi %s1510_s26, %s1746_s26   ;;  %s1452_s25 = sphi %s1508_s25, %s1745_s25   ;;  %s1448_s24 = sphi %s1506_s24, %s1744_s24  }
   0x5   : > { %s1531_s30 = sadd.s32 1, %s1460_s27   ;;  %s180_s8 = sadd.s32 1, %s1456_s26 }
   0x6   : > { %s177_s9 = ssub.s32 %s1460_s27, %s1531_s30  ;;  %p190_p0 = scmp.ne.s32.totalorder %s1456_s26, %s1452_s25 }
   0x7   : > { %p178_p1 = scmp.eq.s32.totalorder %s177_s9, 0  ;;  %p191_p2 = scmp.eq.s32.totalorder %s1527_s28, 1 }
   0x8   : > { %p196_p3 = scmp.ne.s32.totalorder %s1452_s25, %s1448_s24  ;;  %p197_p4 = scmp.eq.s32.totalorder %s1269_s29, 1 }
   0x9   : > { %s1542_s10 = scalar_select %p178_p1, %s1456_s26, %s180_s8  }
   0xa   : > { %p1544_p5 = por %p191_p2, %p190_p0  ;;  %p1548_p6 = por %p197_p4, %p196_p3 }
   0xb   : > { %p1270_p7 = scmp.ge.s32.totalorder %s1460_s27, 1  ;;  %p204_p8 = scmp.lt.s32.totalorder %s1460_s27, 3 }
   0xc   : > { %s1735_s11 = scalar_select %p1544_p5, 1, 0 }
   0xd   : > { %s1736_s12 = scalar_select %p1548_p6, 1, 0 }
   0xe   : > { %p1732_p9 = scmp.eq.s32.totalorder %s1527_s28, 0  ;;  %p1555_p10 = pnand %p1270_p7, %p204_p8 }
   0xf   : > { %s1462_s14 = smov [#allocation2]   ;;  %s1366_s19 = scalar_lea.hbm %s1727_s3, 128 }
  0x10   : > { %s1737_s13 = scalar_select %p1555_p10, 1, 0 }
  0x11   : > { %s223_s15 = sshll.u32 %s1462_s14, 4  ;;  %p1309_p11 = pneg %p1555_p10  ;;  %s224_s15 = int_to_ptr.vmem [resolvable:$true] %s223_s15 }
  0x12   : > { %p1367_p13 = scmp.ne.s32.totalorder %s1727_s3, %s1366_s19  ;;  %p1373_p3 = scmp.lt.u32.totalorder %s1366_s19, %s1727_s3 }
  0x13   : > { %p1563_p12 = pnand %p1732_p9, %p1309_p11 }
  0x15   : > { %p1368_p0 = pneg %p1563_p12 }
  0x17   : > { %p1369_p1 = pnand %p1368_p0, %p1367_p13 }
  0x19   : > { %p1370_p2 = pneg %p1369_p1 }
  0x1b   : > { %p1375_p4 = pnand %p1373_p3, %p1370_p2 }
  0x1d   : > { %1378 = shalt.err (!%p1375_p4)
}
  0x1e   : > { %s1379_s29 = scalar_lea.vmem %s224_s15, 128  ;;  %p1387_p9 = scmp.lt.s32.totalorder %s224_s15, %s224_s15 }
  0x1f   : > { %p1380_p7 = scmp.ne.s32.totalorder %s224_s15, %s1379_s29  ;;  %p1388_p6 = scmp.lt.s32.totalorder %s1379_s29, %s1379_s29 }
  0x21   : > { %p1382_p8 = pnand %p1380_p7, %p1368_p0  ;;  %p1389_p5 = por %p1388_p6, %p1387_p9 }
  0x23   : > { %p1383_p11 = pneg %p1382_p8 }
  0x25   : > { %p1390_p10 = pnand %p1389_p5, %p1383_p11 }
  0x27   : > { %1393 = shalt.err (!%p1390_p10)
}
  0x28   : > { %1312 = dma.hbm_to_vmem [thread:$0]  (!%p1563_p12), %s1727_s3, 128, %s224_s15, [#allocation3]  }
  0x29   : > { %p1739_p13 = scmp.ne.s32.totalorder %s1737_s13, 0 }
  0x2a   : > { %p1740_p1 = scmp.eq.s32.totalorder (!%p1739_p13), %s1527_s28, 0 }
  0x2b   : > { %253 = sbr.rel (%p1739_p13) target bundleno = 1631 (0x65f), region = 48 }
  0x32   : > { %1439 = dma.done.wait (%p1740_p1), [#allocation3], 128   ;;  %p1741_p0 = pmov %p1740_p1 }
  0x33   : > { %p285_p6 = scmp.lt.s32.totalorder %s1527_s28, 1  ;;  %v1463_v0 = vmov 0.0   ;;  %vm301_vm0 = vcmask 1043456   ;;  %v292_v5 = vld [vmem:[%s1725_s1] sm:$0xff]  ;;  %vm297_vm1 = vcmask 31744   ;;  %vm485_vm2 = vcmask 64512  }
  0x34   : > { %1441 = vsyncadd (%p1741_p0), [#allocation3], 4294967168  ;;  %374 = vmatprep.mubr.f32.mxu0 %v1463_v0  ;;  %445 = vmatprep.mubr.f32.mxu1 %v1463_v0  ;;  %v484_v40 = vld [vmem:[%s1726_s2] sm:$0xff]  ;;  %v1464_v43 = vmov 0   ;;  %s1302_s17 = sshll.u32 %s1527_s28, 9  ;;  %p1742_p9 = scmp.ne.s32.totalorder %s1735_s11, 0 }
  0x35   : > { %s286_s14 = scalar_select %p285_p6, %s1527_s28, 1  ;;  %v659_v41 = vld [vmem:[%s1729_s5] sm:$0xff]  ;;  %1355 = vset.pattern.permute.xlu0 %v1464_v43 }
  0x36   : > { %v660_v42 = vld [vmem:[%s1730_s6] sm:$0xff]  ;;  %s1682_s20 = scalar_lea.hbm %s1731_s7, %s1302_s17  ;;  %s1465_s23 = smov [#allocation5]  }
  0x37   : > { %s1301_s16 = sshll.u32 %s286_s14, 4  ;;  %s1398_s29 = sshll.u32 %s1465_s23, 4  ;;  %s1399_s29 = int_to_ptr.vmem [resolvable:$false] %s1398_s29 }
  0x38   : > { %s289_s13 = scalar_lea.vmem %s1724_s0, %s1301_s16  ;;  %s282_s16 = sand.u32 1, %s1452_s25  }
  0x39   : > { %v1596_v1 = vld [vmem:[%s289_s13] sm:$0xff]  ;;  %v1598_v2 = vld [vmem:[%s289_s13 + $0x8] sm:$0xff]  ;;  %s1275_s15 = sshll.u32 %s282_s16, 5  ;;  %s1184_s21 = scalar_lea.sflag [#allocation4], %s282_s16 }
  0x3a   : > { %v295_v3 = vcombine.high %v1596_v1, %v1596_v1  ;;  %v296_v4 = vcombine.high %v1598_v2, %v1598_v2  ;;  %s284_s13 = scalar_lea.vmem [#allocation5], %s1275_s15  ;;  %s1400_s8 = scalar_lea.vmem %s1399_s29, 1024 }
  0x3b   : > { %s1198_s18 = sshll.u32 %s284_s13, 4  ;;  %s1684_s18 = int_to_ptr.vmem [resolvable:$true] %s1198_s18 }
  0x3c   : > { %1278 = vmatprep.subr.msk.mxu0 %vm301_vm0, %v295_v3  ;;  %1281 = vmatprep.subr.msk.mxu1 %vm301_vm0, %v296_v4  ;;  %s1394_s22 = scalar_lea.vmem %s1684_s18, 512  ;;  %p1401_p2 = scmp.lt.s32.totalorder %s1684_s18, %s1399_s29 }
  0x3d   : > { %1279 = vmatpush1.msk.msra.mxu0 %vm301_vm0, %v1596_v1  ;;  %1282 = vmatpush1.msk.msra.mxu1 %vm301_vm0, %v1598_v2  ;;  %p1395_p5 = scmp.ne.s32.totalorder %s1684_s18, %s1394_s22  ;;  %p1402_p3 = scmp.lt.s32.totalorder %s1400_s8, %s1394_s22 }
  0x3e   : > { %1280 = vmatmul.mubr.msk.f32.vlgmr.msra.gmra.mrb[0].mxu0 %vm297_vm1, %v292_v5  ;;  %1283 = vmatmul.mubr.msk.f32.vlgmr.msra.gmra.mrb[0].mxu1 %vm297_vm1, %v292_v5 }
  0x3f   : > { %553 = vmatprep.mubr.f32.mxu0 %v1463_v0  ;;  %624 = vmatprep.mubr.f32.mxu1 %v1463_v0  ;;  %p1396_p10 = pnand %p1395_p5, %p1742_p9  ;;  %p1403_p4 = por %p1402_p3, %p1401_p2 }
  0x41   : > { %p1397_p12 = pneg %p1396_p10 }
  0x43   : > { %p1404_p7 = pnand %p1403_p4, %p1397_p12 }
 0x111   : > { %v376_v6 = vpop.f32.mrb[0].mxu0  ;;  %v447_v7 = vpop.f32.mrb[0].mxu1 }
 0x112   : > { %v458_v8 = vmul.f32 %v376_v6, %v376_v6  ;;  %v378_v9 = vpop.f32.mrb[1].mxu0  ;;  %v449_v10 = vpop.f32.mrb[1].mxu1  ;;  %v460_v13 = vmul.f32 %v447_v7, %v447_v7 }
 0x113   : > { %v452_v11 = vadd.f32 %v378_v9, %v376_v6  ;;  %v459_v12 = vmul.f32 %v378_v9, %v378_v9  ;;  %v461_v17 = vmul.f32 %v449_v10, %v449_v10 }
 0x115   : > { %v453_v14 = vadd.f32 %v452_v11, %v447_v7  ;;  %v462_v15 = vadd.f32 %v459_v12, %v458_v8 }
 0x117   : > { %v454_v16 = vadd.f32 %v453_v14, %v449_v10  ;;  %v463_v18 = vadd.f32 %v462_v15, %v460_v13 }
 0x119   : > { %455 = vadd.xlane.f32.xlu0 %v454_v16  ;;  %v464_v19 = vadd.f32 %v463_v18, %v461_v17 }
 0x11d   : > { %465 = vadd.xlane.f32.xlu0 %v464_v19 }
 0x133   : > { %663 = vperm.xlu0 %1355, %v660_v42  }
 0x1a6   : > { %v456_v20 = vpop.xlane.xlu0 %455 }
 0x1a7   : > { %v457_v21 = vmul.f32 0.001953125, %v456_v20 }
 0x1a9   : > { %v468_v23 = vmul.f32 %v457_v21, %v457_v21  ;;  %v471_v27 = vsub.f32 %v378_v9, %v457_v21  ;;  %v473_v28 = vsub.f32 %v449_v10, %v457_v21  ;;  %v470_v29 = vsub.f32 %v376_v6, %v457_v21 }
 0x1aa   : > { %v466_v22 = vpop.xlane.xlu0 %465  ;;  %v472_v30 = vsub.f32 %v447_v7, %v457_v21 }
 0x1ab   : > { %v467_v24 = vmul.f32 0.001953125, %v466_v22 }
 0x1ad   : > { %v469_v25 = vsub.f32 %v467_v24, %v468_v23 }
 0x1af   : > { %v474_v26 = vadd.f32 1e-05, %v469_v25 }
 0x1b1   : > { %1358 = vrsqrt.f32 %v474_v26 }
 0x1b2   : > { %v664_v6 = vpop.permute.xlu0 %663 }
 0x1bb   : > { %v1359_v31 = vpop.eup %1358 }
 0x1bc   : > { %v477_v32 = vmul.f32 %v1359_v31, %v471_v27  ;;  %v479_v33 = vmul.f32 %v1359_v31, %v473_v28  ;;  %v476_v34 = vmul.f32 %v1359_v31, %v470_v29  ;;  %v478_v35 = vmul.f32 %v1359_v31, %v472_v30  ;;  %v819_v28 = vld [vmem:[#allocation2] sm:$0xff] }
 0x1be   : > { %v481_v36 = vmax.f32 %v477_v32, 0.0  ;;  %v483_v37 = vmax.f32 %v479_v33, 0.0  ;;  %v480_v38 = vmax.f32 %v476_v34, 0.0  ;;  %v482_v39 = vmax.f32 %v478_v35, 0.0 }
 0x1c0   : > { %489 = vmatprep.subr.mxu0 %v481_v36  ;;  %560 = vmatprep.subr.mxu1 %v483_v37 }
 0x1c1   : > { %490 = vmatpush1.msra.mxu0 %v480_v38  ;;  %561 = vmatpush1.msra.mxu1 %v482_v39 }
 0x1c2   : > { %1284 = vmatmul.mubr.msk.f32.vlgmr.msra.gmra.mrb[2].mxu0 %vm485_vm2, %v484_v40  ;;  %1285 = vmatmul.mubr.msk.f32.vlgmr.msra.gmra.mrb[2].mxu1 %vm485_vm2, %v484_v40 }
 0x1c3   : > { %1286 = vmatprep.subr.msk.mxu0 %vm301_vm0, %v295_v3  ;;  %733 = vmatprep.mubr.f32.mxu0 %v1463_v0 }
 0x1c4   : > { %1287 = vmatpush1.msk.msra.mxu0 %vm301_vm0, %v1596_v1  ;;  %1289 = vmatprep.subr.msk.mxu1 %vm301_vm0, %v296_v4 }
 0x1c5   : > { %1290 = vmatpush1.msk.msra.mxu1 %vm301_vm0, %v1598_v2  ;;  %804 = vmatprep.mubr.f32.mxu1 %v1463_v0 }
 0x1c6   : > { %1288 = vmatmul.mubr.msk.f32.vlgmr.msra.gmra.mrb[4].mxu0 %vm297_vm1, %v659_v41  ;;  %1291 = vmatmul.mubr.msk.f32.vlgmr.msra.gmra.mrb[4].mxu1 %vm297_vm1, %v659_v41 }
 0x1c7   : > { %887 = vmatprep.mubr.f32.mxu0 %v1463_v0  ;;  %958 = vmatprep.mubr.f32.mxu1 %v1463_v0 }
 0x295   : > { %v555_v44 = vpop.f32.mrb[2].mxu0  ;;  %v626_v45 = vpop.f32.mrb[2].mxu1 }
 0x296   : > { %v637_v46 = vmul.f32 %v555_v44, %v555_v44  ;;  %v557_v47 = vpop.f32.mrb[3].mxu0  ;;  %v628_v48 = vpop.f32.mrb[3].mxu1  ;;  %v639_v51 = vmul.f32 %v626_v45, %v626_v45 }
 0x297   : > { %v631_v49 = vadd.f32 %v557_v47, %v555_v44  ;;  %v638_v50 = vmul.f32 %v557_v47, %v557_v47  ;;  %v640_v55 = vmul.f32 %v628_v48, %v628_v48 }
 0x299   : > { %v632_v52 = vadd.f32 %v631_v49, %v626_v45  ;;  %v641_v53 = vadd.f32 %v638_v50, %v637_v46  ;;  %v735_v58 = vpop.f32.mrb[4].mxu0  ;;  %v806_v59 = vpop.f32.mrb[4].mxu1 }
 0x29a   : > { %v737_v60 = vpop.f32.mrb[5].mxu0  ;;  %v808_v61 = vpop.f32.mrb[5].mxu1  ;;  %v736_v7 = vadd.f32 %v735_v58, %v664_v6  ;;  %v807_v9 = vadd.f32 %v806_v59, %v664_v6 }
 0x29b   : > { %v633_v54 = vadd.f32 %v632_v52, %v628_v48  ;;  %v642_v56 = vadd.f32 %v641_v53, %v639_v51  ;;  %v738_v8 = vadd.f32 %v737_v60, %v664_v6  ;;  %v809_v10 = vadd.f32 %v808_v61, %v664_v6 }
 0x29d   : > { %634 = vadd.xlane.f32.xlu1 %v633_v54  ;;  %v643_v57 = vadd.f32 %v642_v56, %v640_v55 }
 0x2a1   : > { %644 = vadd.xlane.f32.xlu1 %v643_v57 }
 0x32a   : > { %v635_v62 = vpop.xlane.xlu1 %634 }
 0x32b   : > { %v636_v63 = vmul.f32 0.001953125, %v635_v62  ;;  %v997_v62 = vld [vmem:[%s1728_s4] sm:$0xff] }
 0x32d   : > { %v647_v2 = vmul.f32 %v636_v63, %v636_v63  ;;  %v649_v11 = vsub.f32 %v555_v44, %v636_v63  ;;  %v651_v12 = vsub.f32 %v626_v45, %v636_v63  ;;  %v652_v13 = vsub.f32 %v628_v48, %v636_v63 }
 0x32e   : > { %v645_v1 = vpop.xlane.xlu1 %644  ;;  %v650_v14 = vsub.f32 %v557_v47, %v636_v63 }
 0x32f   : > { %v646_v3 = vmul.f32 0.001953125, %v645_v1 }
 0x331   : > { %v648_v4 = vsub.f32 %v646_v3, %v647_v2 }
 0x333   : > { %v653_v5 = vadd.f32 1e-05, %v648_v4 }
 0x335   : > { %1360 = vrsqrt.f32 %v653_v5 }
 0x33f   : > { %v1361_v15 = vpop.eup %1360 }
 0x340   : > { %v655_v16 = vmul.f32 %v1361_v15, %v649_v11  ;;  %v657_v17 = vmul.f32 %v1361_v15, %v651_v12  ;;  %v658_v18 = vmul.f32 %v1361_v15, %v652_v13  ;;  %v656_v19 = vmul.f32 %v1361_v15, %v650_v14 }
 0x342   : > { %v1640_v20 = vadd.f32 %v736_v7, %v655_v16  ;;  %v1642_v21 = vadd.f32 %v807_v9, %v657_v17  ;;  %v1644_v22 = vadd.f32 %v809_v10, %v658_v18  ;;  %v1646_v23 = vadd.f32 %v738_v8, %v656_v19 }
 0x344   : > { %v815_v24 = vmax.f32 %v1640_v20, 0.0  ;;  %v817_v25 = vmax.f32 %v1642_v21, 0.0  ;;  %v818_v26 = vmax.f32 %v1644_v22, 0.0  ;;  %v816_v27 = vmax.f32 %v1646_v23, 0.0 }
 0x346   : > { %823 = vmatprep.subr.mxu0 %v816_v27  ;;  %894 = vmatprep.subr.mxu1 %v818_v26 }
 0x347   : > { %824 = vmatpush1.msra.mxu0 %v815_v24  ;;  %895 = vmatpush1.msra.mxu1 %v817_v25 }
 0x348   : > { %1292 = vmatmul.mubr.msk.f32.vlgmr.msra.gmra.mrb[6].mxu0 %vm485_vm2, %v819_v28  ;;  %1293 = vmatmul.mubr.msk.f32.vlgmr.msra.gmra.mrb[6].mxu1 %vm485_vm2, %v819_v28 }
 0x349   : > { %1065 = vmatprep.mubr.f32.mxu0 %v1463_v0  ;;  %1136 = vmatprep.mubr.f32.mxu1 %v1463_v0 }
 0x41b   : > { %v889_v29 = vpop.f32.mrb[6].mxu0  ;;  %v960_v30 = vpop.f32.mrb[6].mxu1 }
 0x41c   : > { %v971_v31 = vmul.f32 %v889_v29, %v889_v29  ;;  %v891_v32 = vpop.f32.mrb[7].mxu0  ;;  %v962_v33 = vpop.f32.mrb[7].mxu1  ;;  %v973_v36 = vmul.f32 %v960_v30, %v960_v30 }
 0x41d   : > { %v965_v34 = vadd.f32 %v891_v32, %v889_v29  ;;  %v972_v35 = vmul.f32 %v891_v32, %v891_v32  ;;  %v974_v40 = vmul.f32 %v962_v33, %v962_v33 }
 0x41f   : > { %v966_v37 = vadd.f32 %v965_v34, %v960_v30  ;;  %v975_v38 = vadd.f32 %v972_v35, %v971_v31 }
 0x421   : > { %v967_v39 = vadd.f32 %v966_v37, %v962_v33  ;;  %v976_v41 = vadd.f32 %v975_v38, %v973_v36 }
 0x423   : > { %968 = vadd.xlane.f32.xlu1 %v967_v39  ;;  %v977_v42 = vadd.f32 %v976_v41, %v974_v40 }
 0x427   : > { %978 = vadd.xlane.f32.xlu1 %v977_v42 }
 0x4b0   : > { %v969_v43 = vpop.xlane.xlu1 %968 }
 0x4b1   : > { %v970_v44 = vmul.f32 0.001953125, %v969_v43 }
 0x4b3   : > { %v981_v0 = vmul.f32 %v970_v44, %v970_v44  ;;  %v984_v49 = vsub.f32 %v891_v32, %v970_v44  ;;  %v986_v50 = vsub.f32 %v962_v33, %v970_v44  ;;  %v983_v51 = vsub.f32 %v889_v29, %v970_v44 }
 0x4b4   : > { %v979_v45 = vpop.xlane.xlu1 %978  ;;  %v985_v52 = vsub.f32 %v960_v30, %v970_v44 }
 0x4b5   : > { %v980_v46 = vmul.f32 0.001953125, %v979_v45 }
 0x4b7   : > { %v982_v47 = vsub.f32 %v980_v46, %v981_v0 }
 0x4b9   : > { %v987_v48 = vadd.f32 1e-05, %v982_v47 }
 0x4bb   : > { %1362 = vrsqrt.f32 %v987_v48 }
 0x4c5   : > { %v1363_v53 = vpop.eup %1362 }
 0x4c6   : > { %v990_v54 = vmul.f32 %v1363_v53, %v984_v49  ;;  %v992_v55 = vmul.f32 %v1363_v53, %v986_v50  ;;  %v989_v56 = vmul.f32 %v1363_v53, %v983_v51  ;;  %v991_v57 = vmul.f32 %v1363_v53, %v985_v52 }
 0x4c8   : > { %v994_v58 = vmax.f32 %v990_v54, 0.0  ;;  %v996_v59 = vmax.f32 %v992_v55, 0.0  ;;  %v993_v60 = vmax.f32 %v989_v56, 0.0  ;;  %v995_v61 = vmax.f32 %v991_v57, 0.0 }
 0x4ca   : > { %1001 = vmatprep.subr.mxu0 %v994_v58  ;;  %1072 = vmatprep.subr.mxu1 %v996_v59 }
 0x4cb   : > { %1002 = vmatpush1.msra.mxu0 %v993_v60  ;;  %1073 = vmatpush1.msra.mxu1 %v995_v61 }
 0x4cc   : > { %1294 = vmatmul.mubr.msk.f32.vlgmr.msra.gmra.mrb[8].mxu0 %vm485_vm2, %v997_v62  ;;  %1295 = vmatmul.mubr.msk.f32.vlgmr.msra.gmra.mrb[8].mxu1 %vm485_vm2, %v997_v62 }
 0x59f   : > { %v1067_v63 = vpop.f32.mrb[8].mxu0  ;;  %v1138_v1 = vpop.f32.mrb[8].mxu1 }
 0x5a0   : > { %v1149_v2 = vmul.f32 %v1067_v63, %v1067_v63  ;;  %v1069_v3 = vpop.f32.mrb[9].mxu0  ;;  %v1140_v4 = vpop.f32.mrb[9].mxu1  ;;  %v1151_v7 = vmul.f32 %v1138_v1, %v1138_v1 }
 0x5a1   : > { %v1143_v5 = vadd.f32 %v1069_v3, %v1067_v63  ;;  %v1150_v6 = vmul.f32 %v1069_v3, %v1069_v3  ;;  %v1152_v10 = vmul.f32 %v1140_v4, %v1140_v4 }
 0x5a3   : > { %v1153_v8 = vadd.f32 %v1150_v6, %v1149_v2  ;;  %v1144_v9 = vadd.f32 %v1143_v5, %v1138_v1 }
 0x5a5   : > { %v1145_v11 = vadd.f32 %v1144_v9, %v1140_v4  ;;  %v1154_v12 = vadd.f32 %v1153_v8, %v1151_v7 }
 0x5a7   : > { %1146 = vadd.xlane.f32.xlu1 %v1145_v11  ;;  %v1155_v13 = vadd.f32 %v1154_v12, %v1152_v10 }
 0x5ab   : > { %1156 = vadd.xlane.f32.xlu1 %v1155_v13 }
 0x634   : > { %v1147_v14 = vpop.xlane.xlu1 %1146 }
 0x635   : > { %v1148_v15 = vmul.f32 0.001953125, %v1147_v14 }
 0x637   : > { %v1159_v17 = vmul.f32 %v1148_v15, %v1148_v15  ;;  %v1161_v29 = vsub.f32 %v1067_v63, %v1148_v15  ;;  %v1162_v30 = vsub.f32 %v1069_v3, %v1148_v15  ;;  %v1163_v31 = vsub.f32 %v1138_v1, %v1148_v15 }
 0x638   : > { %v1157_v16 = vpop.xlane.xlu1 %1156  ;;  %v1164_v32 = vsub.f32 %v1140_v4, %v1148_v15 }
 0x639   : > { %v1158_v18 = vmul.f32 0.001953125, %v1157_v16 }
 0x63b   : > { %v1160_v19 = vsub.f32 %v1158_v18, %v1159_v17 }
 0x63d   : > { %v1165_v28 = vadd.f32 1e-05, %v1160_v19 }
 0x63f   : > { %1364 = vrsqrt.f32 %v1165_v28 }
 0x649   : > { %v1365_v33 = vpop.eup %1364 }
 0x64a   : > { %v1167_v34 = vmul.f32 %v1365_v33, %v1161_v29  ;;  %v1168_v35 = vmul.f32 %v1365_v33, %v1162_v30  ;;  %v1169_v36 = vmul.f32 %v1365_v33, %v1163_v31  ;;  %v1170_v37 = vmul.f32 %v1365_v33, %v1164_v32 }
 0x64c   : > { %v1171_v38 = vadd.f32 %v1167_v34, %v815_v24  ;;  %v1172_v39 = vadd.f32 %v1168_v35, %v816_v27  ;;  %v1173_v40 = vadd.f32 %v1169_v36, %v817_v25  ;;  %v1174_v41 = vadd.f32 %v1170_v37, %v818_v26 }
 0x64e   : > { %v1175_v42 = vmax.f32 %v1171_v38, 0.0  ;;  %v1176_v43 = vmax.f32 %v1172_v39, 0.0  ;;  %v1177_v44 = vmax.f32 %v1173_v40, 0.0  ;;  %v1178_v45 = vmax.f32 %v1174_v41, 0.0 }
 0x650   : > { %1179 = vst [vmem:[%s284_s13] sm:$0xff] %v1175_v42  ;;  %1180 = vst [vmem:[%s284_s13 + $0x8] sm:$0xff] %v1176_v43 }
 0x651   : > { %1181 = vst [vmem:[%s284_s13 + $0x10] sm:$0xff] %v1177_v44  ;;  %1182 = vst [vmem:[%s284_s13 + $0x18] sm:$0xff] %v1178_v45 }
 0x652   : > { %1407 = shalt.err (!%p1404_p7)
}
 0x653   : > { %s1408_s9 = scalar_lea.hbm %s1682_s20, 512  ;;  %s1412_s15 = scalar_lea.hbm %s1731_s7, 1024 }
 0x654   : > { %p1409_p8 = scmp.ne.s32.totalorder %s1682_s20, %s1408_s9  ;;  %p1413_p1 = scmp.lt.u32.totalorder %s1682_s20, %s1731_s7 }
 0x655   : > { %p1414_p0 = scmp.lt.u32.totalorder %s1412_s15, %s1408_s9  ;;  %p1416_p5 = scmp.lt.u32.totalorder %s1408_s9, %s1682_s20 }
 0x656   : > { %p1410_p11 = pnand %p1409_p8, %p1742_p9 }
 0x657   : > { %p1415_p6 = por %p1414_p0, %p1413_p1 }
 0x658   : > { %p1411_p13 = pneg %p1410_p11 }
 0x659   : > { %p1417_p10 = por %p1416_p5, %p1415_p6 }
 0x65b   : > { %p1418_p12 = pnand %p1417_p10, %p1411_p13 }
 0x65d   : > { %1421 = shalt.err (!%p1418_p12)
}
 0x65e   : > { %1307 = dma.vmem_to_hbm [thread:$0]  (%p1742_p9), %s1684_s18, 512, %s1682_s20, %s1184_s21  }
 0x65f PF: > { %p1319_p2 = scmp.ge.s32.totalorder %s1460_s27, 2  ;;  %s1210_s28 = sand.u32 1, %s1448_s24  }
 0x660   : > { %p1743_p3 = scmp.ne.s32.totalorder %s1736_s12, 0  ;;  %s1211_s19 = scalar_lea.sflag [#allocation4], %s1210_s28 }
 0x662   : > { %p1314_p4 = pnand %p1319_p2, %p1743_p3 }
 0x664   : > { %1443 = dma.done.wait (!%p1314_p4), %s1211_s19, 512  }
 0x665   : > { %1445 = vsyncadd (!%p1314_p4), %s1211_s19, 4294966784  ;;  %p18_p7 = scmp.ge.s32.totalorder %s1531_s30, 4   ;;  %s1744_s24 = smov %s1452_s25 }
 0x666   : > { %s1745_s25 = smov %s1456_s26  ;;  %s1746_s26 = smov %s1542_s10 }
 0x667   : > { %s1747_s27 = smov %s1531_s30  ;;  %20 = sbr.rel (!%p18_p7) target bundleno = 4 (0x4), region = 88 }
 0x66e   :  { %1216 = vsyncpa [#allocation3], 1 }
 0x66f   :  { %1218 = vsyncpa [#allocation3 + $0x1], 1 }
 0x670   :  { %1219 = vsyncpa [#allocation4], 1 }
 0x671   :  { %1221 = vsyncpa [#allocation4 + $0x1], 1 }

</bundles_post_ra>
